<compile_context>
chip_gen: v5e
topology: v5e:2x2
jax: 0.10.0
libtpu: 0.0.40
codegen_flags: <defaults>
</compile_context>

<pallas_src>
import functools

import jax
import jax.numpy as jnp
from jax.experimental import pallas as pl
from jax.experimental.pallas import tpu as pltpu


def _round_up(x, m):
    return (x + m - 1) // m * m


def _focal_loss_kernel(x_ref, y_ref, out_ref, acc_ref, *,
                       alpha, gamma, eps, n_rows, tile_n, tiles_per_shard):
    s = pl.program_id(0)            # shard (parallel -> TCs on v7x)
    i = pl.program_id(1)            # row tile within the shard (arbitrary)

    @pl.when(i == 0)
    def _():
        acc_ref[...] = jnp.zeros_like(acc_ref)

    x = x_ref[...].astype(jnp.float32)      # (tile_n, C) logits
    y = y_ref[...]                          # (tile_n, 1) int32 labels

    # Numerically-stable softmax pieces; only the true class is materialized.
    m = jnp.max(x, axis=-1, keepdims=True)                     # (tile_n, 1)
    e = jnp.exp(x - m)                                         # (tile_n, C)
    z = jnp.sum(e, axis=-1, keepdims=True)                     # (tile_n, 1)

    class_idx = jax.lax.broadcasted_iota(jnp.int32, x.shape, 1)
    e_y = jnp.sum(jnp.where(class_idx == y, e, 0.0),
                  axis=-1, keepdims=True)                      # (tile_n, 1)

    p_y = jnp.clip(e_y / z, eps, 1.0 - eps)                    # (tile_n, 1)

    omp = 1.0 - p_y
    if float(gamma) == int(gamma):      # integer power -> VPU multiplies only
        g = int(gamma)
        focal = jnp.ones_like(omp) if g == 0 else omp
        for _ in range(max(g - 1, 0)):
            focal = focal * omp
    else:                               # float gamma -> EUP exp/log path
        focal = omp ** gamma

    loss_row = alpha * (-jnp.log(p_y)) * focal                 # (tile_n, 1)

    # Mask rows past the real batch (tail tile and clamped duplicate tiles).
    row0 = (s * tiles_per_shard + i) * tile_n
    row_idx = row0 + jax.lax.broadcasted_iota(jnp.int32, loss_row.shape, 0)
    loss_row = jnp.where(row_idx < n_rows, loss_row, 0.0)

    acc_ref[...] += loss_row

    @pl.when(i == tiles_per_shard - 1)
    def _():
        partial = jnp.sum(acc_ref[...])
        # Lane-dense (8, 128) block; the wrapper reads [0, 0] of each shard.
        out_ref[...] = jnp.zeros((8, 128), jnp.float32) + partial


def focal_loss_pallas(logits, labels, *, alpha=0.25, gamma=2, eps=1e-7,
                      tile_n=512, num_shards=2,
                      vmem_tile_budget=20 * 1024 * 1024):
    """Matches FocalLoss().forward(input, y) with the default reduction.

    logits: (N, C) float array (f32 or bf16)
    labels: (N,) integer array, values in [0, C)
    returns: (None, scalar mean focal loss) -- same tuple as the torch module.
    """
    N, C = logits.shape
    labels2d = labels.astype(jnp.int32).reshape(N, 1)

    # Row tile: as large as possible while double-buffered inputs plus the
    # accumulator fit the budget (v7x only has 64 MiB of VMEM).
    c_pad = _round_up(C, 128)                  # lane padding of the logits tile
    itemsize = jnp.dtype(logits.dtype).itemsize
    tn = max(8, _round_up(min(tile_n, _round_up(N, 8)), 8))

    def _footprint(t):
        return 2 * t * (c_pad * itemsize + 128 * 4) + t * 128 * 4

    while tn > 8 and _footprint(tn) > vmem_tile_budget:
        tn = max(8, _round_up(tn // 2, 8))

    n_tiles = pl.cdiv(N, tn)
    shards = max(1, min(num_shards, n_tiles))
    tiles_per_shard = pl.cdiv(n_tiles, shards)

    def _blk_idx(s, i):
        # Clamp so excess tiles of the last shard never index past the array;
        # the kernel masks those rows to zero anyway.
        return (jnp.minimum(s * tiles_per_shard + i, n_tiles - 1), 0)

    kernel = functools.partial(
        _focal_loss_kernel, alpha=alpha, gamma=gamma, eps=eps,
        n_rows=N, tile_n=tn, tiles_per_shard=tiles_per_shard)

    vmem_limit = int(min(48 * 1024 * 1024,
                         max(16 * 1024 * 1024, 3 * _footprint(tn))))

    out = pl.pallas_call(
        kernel,
        out_shape=jax.ShapeDtypeStruct((shards * 8, 128), jnp.float32),
        grid_spec=pltpu.PrefetchScalarGridSpec(
            num_scalar_prefetch=0,
            grid=(shards, tiles_per_shard),
            in_specs=[
                pl.BlockSpec((tn, C), _blk_idx),   # logits row tile (full C)
                pl.BlockSpec((tn, 1), _blk_idx),   # labels row tile
            ],
            out_specs=pl.BlockSpec((8, 128), lambda s, i: (s, 0)),
            scratch_shapes=[pltpu.VMEM((tn, 1), jnp.float32)],
        ),
        compiler_params=pltpu.CompilerParams(
            dimension_semantics=("parallel", "arbitrary"),
            vmem_limit_bytes=vmem_limit,
        ),
    )(logits, labels2d)

    partials = out.reshape(shards, 8, 128)[:, 0, 0]
    # reduction='elementwise_mean' -> sum / batch_size
    return None, partials.sum() / N


def focal_loss_ref(logits, labels, *, alpha=0.25, gamma=2, eps=1e-7):
    """Pure-JAX reference mirroring the torch code."""
    N, C = logits.shape
    y_hot = jax.nn.one_hot(labels, C, dtype=jnp.float32)
    p = jax.nn.softmax(logits.astype(jnp.float32), axis=-1)
    p = jnp.clip(p, eps, 1.0 - eps)
    loss = alpha * (-y_hot * jnp.log(p)) * (1.0 - p) ** gamma
    return loss.sum() / N


if __name__ == "__main__":
    key = jax.random.PRNGKey(0)
    k1, k2, k3, k4 = jax.random.split(key, 4)

    # Case 1: the module's natural small shape — a batch of logits, 4 classes.
    N1, C1 = 16, 4
    logits1 = jax.random.normal(k1, (N1, C1), dtype=jnp.float32)
    labels1 = jax.random.randint(k2, (N1,), 0, C1, dtype=jnp.int32)
    _, loss1 = focal_loss_pallas(logits1, labels1)
    loss1 = jax.block_until_ready(loss1)
    ref1 = focal_loss_ref(logits1, labels1)
    assert jnp.allclose(loss1, ref1, rtol=1e-5, atol=1e-6), (loss1, ref1)

    # Case 2: ragged batch with multiple row tiles and 2 shards (exercises the
    # tail masking, the clamped duplicate tile and the per-shard partial sums).
    N2, C2 = 40, 6
    logits2 = jax.random.normal(k3, (N2, C2), dtype=jnp.float32)
    labels2 = jax.random.randint(k4, (N2,), 0, C2, dtype=jnp.int32)
    _, loss2 = focal_loss_pallas(logits2, labels2, tile_n=16, num_shards=2)
    loss2 = jax.block_until_ready(loss2)
    ref2 = focal_loss_ref(logits2, labels2)
    assert jnp.allclose(loss2, ref2, rtol=1e-5, atol=1e-6), (loss2, ref2)

    print("KERNEL_OK")
</pallas_src>

<mosaic_0001>
module attributes {stable_mosaic.version = 11 : i64} {
  func.func @_focal_loss_kernel(%arg0: i32, %arg1: i32, %arg2: memref<16x4xf32, #tpu.memory_space<vmem>>, %arg3: memref<16x1xi32, #tpu.memory_space<vmem>>, %arg4: memref<8x128xf32, #tpu.memory_space<vmem>>, %arg5: memref<16x1xf32, #tpu.memory_space<vmem>>) attributes {dimension_semantics = [#tpu.dimension_semantics<parallel>, #tpu.dimension_semantics<arbitrary>], iteration_bounds = array<i64: 1, 1>, scalar_prefetch = 0 : i64, scratch_operands = 1 : i64, tpu.core_type = #tpu.core_type<tc>, window_params = [{transform_indices = @transform_0, window_bounds = array<i64: 16, 4>}, {transform_indices = @transform_1, window_bounds = array<i64: 16, 1>}, {transform_indices = @transform_2, window_bounds = array<i64: 8, 128>}]} {
    %c0_i32 = arith.constant 0 : i32
    %0 = arith.cmpi eq, %arg1, %c0_i32 : i32
    %1 = arith.extui %0 : i1 to i32
    %c0_i32_0 = arith.constant 0 : i32
    %2 = arith.cmpi ne, %1, %c0_i32_0 : i32
    scf.if %2 {
      %cst_20 = arith.constant 0.000000e+00 : f32
      %49 = vector.broadcast %cst_20 : f32 to vector<16x1xf32>
      %c0_21 = arith.constant 0 : index
      %c0_22 = arith.constant 0 : index
      %50 = vector.load %arg5[%c0_21, %c0_22] : memref<16x1xf32, #tpu.memory_space<vmem>>, vector<16x1xf32>
      tpu.vector_store %arg5[%c0_21, %c0_22], %49 {strides = array<i32>} : memref<16x1xf32, #tpu.memory_space<vmem>>, vector<16x1xf32>,
    } else {
    }
    %c0 = arith.constant 0 : index
    %c0_1 = arith.constant 0 : index
    %3 = vector.load %arg2[%c0, %c0_1] : memref<16x4xf32, #tpu.memory_space<vmem>>, vector<16x4xf32>
    %c0_2 = arith.constant 0 : index
    %c0_3 = arith.constant 0 : index
    %4 = vector.load %arg3[%c0_2, %c0_3] : memref<16x1xi32, #tpu.memory_space<vmem>>, vector<16x1xi32>
    %cst = arith.constant dense<0xFF800000> : vector<16xf32>
    %5 = vector.multi_reduction <maximumf>, %3, %cst [1] : vector<16x4xf32> to vector<16xf32>
    %6 = vector.shape_cast %5 : vector<16xf32> to vector<16x1xf32>
    %7 = vector.broadcast %6 : vector<16x1xf32> to vector<16x4xf32>
    %8 = arith.subf %3, %7 : vector<16x4xf32>
    %9 = math.exp %8 : vector<16x4xf32>
    %cst_4 = arith.constant dense<0.000000e+00> : vector<16xf32>
    %10 = vector.multi_reduction <add>, %9, %cst_4 [1] : vector<16x4xf32> to vector<16xf32>
    %11 = vector.shape_cast %10 : vector<16xf32> to vector<16x1xf32>
    %12 = tpu.iota {dimensions = array<i32: 1>} : vector<16x4xi32>
    %13 = vector.broadcast %4 : vector<16x1xi32> to vector<16x4xi32>
    %14 = arith.cmpi eq, %12, %13 : vector<16x4xi32>
    %cst_5 = arith.constant 0.000000e+00 : f32
    %15 = vector.broadcast %cst_5 : f32 to vector<16x4xf32>
    %16 = arith.select %14, %9, %15 : vector<16x4xi1>, vector<16x4xf32>
    %cst_6 = arith.constant dense<0.000000e+00> : vector<16xf32>
    %17 = vector.multi_reduction <add>, %16, %cst_6 [1] : vector<16x4xf32> to vector<16xf32>
    %18 = vector.shape_cast %17 : vector<16xf32> to vector<16x1xf32>
    %19 = arith.divf %18, %11 : vector<16x1xf32>
    %cst_7 = arith.constant 1.000000e-07 : f32
    %cst_8 = arith.constant 0.99999988 : f32
    %20 = vector.broadcast %cst_7 : f32 to vector<16x1xf32>
    %21 = arith.maximumf %20, %19 : vector<16x1xf32>
    %22 = vector.broadcast %cst_8 : f32 to vector<16x1xf32>
    %23 = arith.minimumf %22, %21 : vector<16x1xf32>
    %cst_9 = arith.constant 1.000000e+00 : f32
    %24 = vector.broadcast %cst_9 : f32 to vector<16x1xf32>
    %25 = arith.subf %24, %23 : vector<16x1xf32>
    %26 = arith.mulf %25, %25 : vector<16x1xf32>
    %27 = math.log %23 : vector<16x1xf32>
    %cst_10 = arith.constant 0.000000e+00 : f32
    %28 = vector.broadcast %cst_10 : f32 to vector<16x1xf32>
    %29 = arith.subf %28, %27 : vector<16x1xf32>
    %cst_11 = arith.constant 2.500000e-01 : f32
    %30 = vector.broadcast %cst_11 : f32 to vector<16x1xf32>
    %31 = arith.mulf %30, %29 : vector<16x1xf32>
    %32 = arith.mulf %31, %26 : vector<16x1xf32>
    %c1_i32 = arith.constant 1 : i32
    %33 = arith.muli %arg0, %c1_i32 : i32
    %34 = arith.addi %33, %arg1 : i32
    %c16_i32 = arith.constant 16 : i32
    %35 = arith.muli %34, %c16_i32 : i32
    %36 = tpu.iota {dimensions = array<i32: 0>} : vector<16x1xi32>
    %37 = vector.broadcast %35 : i32 to vector<16x1xi32>
    %38 = arith.addi %37, %36 : vector<16x1xi32>
    %c16_i32_12 = arith.constant 16 : i32
    %39 = vector.broadcast %c16_i32_12 : i32 to vector<16x1xi32>
    %40 = arith.cmpi slt, %38, %39 : vector<16x1xi32>
    %cst_13 = arith.constant 0.000000e+00 : f32
    %41 = vector.broadcast %cst_13 : f32 to vector<16x1xf32>
    %42 = arith.select %40, %32, %41 : vector<16x1xi1>, vector<16x1xf32>
    %c0_14 = arith.constant 0 : index
    %c0_15 = arith.constant 0 : index
    %43 = vector.load %arg5[%c0_14, %c0_15] : memref<16x1xf32, #tpu.memory_space<vmem>>, vector<16x1xf32>
    %44 = arith.addf %43, %42 : vector<16x1xf32>
    %c0_16 = arith.constant 0 : index
    %c0_17 = arith.constant 0 : index
    %45 = vector.load %arg5[%c0_16, %c0_17] : memref<16x1xf32, #tpu.memory_space<vmem>>, vector<16x1xf32>
    tpu.vector_store %arg5[%c0_16, %c0_17], %44 {strides = array<i32>} : memref<16x1xf32, #tpu.memory_space<vmem>>, vector<16x1xf32>,
    %c0_i32_18 = arith.constant 0 : i32
    %46 = arith.cmpi eq, %arg1, %c0_i32_18 : i32
    %47 = arith.extui %46 : i1 to i32
    %c0_i32_19 = arith.constant 0 : i32
    %48 = arith.cmpi ne, %47, %c0_i32_19 : i32
    scf.if %48 {
      %c0_20 = arith.constant 0 : index
      %c0_21 = arith.constant 0 : index
      %49 = vector.load %arg5[%c0_20, %c0_21] : memref<16x1xf32, #tpu.memory_space<vmem>>, vector<16x1xf32>
      %50 = vector.shape_cast %49 : vector<16x1xf32> to vector<1x16x1xf32>
      %cst_22 = arith.constant dense<0.000000e+00> : vector<1xf32>
      %51 = vector.multi_reduction <add>, %50, %cst_22 [1, 2] : vector<1x16x1xf32> to vector<1xf32>
      %52 = vector.shape_cast %51 : vector<1xf32> to vector<1x1x1xf32>
      %53 = vector.extract %52[0, 0, 0] : f32 from vector<1x1x1xf32>
      %cst_23 = arith.constant 0.000000e+00 : f32
      %54 = vector.broadcast %cst_23 : f32 to vector<8x128xf32>
      %55 = vector.broadcast %53 : f32 to vector<8x128xf32>
      %56 = arith.addf %54, %55 : vector<8x128xf32>
      %c0_24 = arith.constant 0 : index
      %c0_25 = arith.constant 0 : index
      %57 = vector.load %arg4[%c0_24, %c0_25] : memref<8x128xf32, #tpu.memory_space<vmem>>, vector<8x128xf32>
      tpu.vector_store %arg4[%c0_24, %c0_25], %56 {strides = array<i32>} : memref<8x128xf32, #tpu.memory_space<vmem>>, vector<8x128xf32>,
    } else {
    }
    return
  }
  func.func @transform_0(%arg0: i32, %arg1: i32) -> (i32, i32) {
    %c1_i32 = arith.constant 1 : i32
    %0 = arith.muli %arg0, %c1_i32 : i32
    %1 = arith.addi %0, %arg1 : i32
    %c0_i32 = arith.constant 0 : i32
    %2 = arith.minsi %1, %c0_i32 : i32
    %c0_i32_0 = arith.constant 0 : i32
    %c0_i32_1 = arith.constant 0 : i32
    return %2, %c0_i32_0 : i32, i32
  }
  func.func @transform_1(%arg0: i32, %arg1: i32) -> (i32, i32) {
    %c1_i32 = arith.constant 1 : i32
    %0 = arith.muli %arg0, %c1_i32 : i32
    %1 = arith.addi %0, %arg1 : i32
    %c0_i32 = arith.constant 0 : i32
    %2 = arith.minsi %1, %c0_i32 : i32
    %c0_i32_0 = arith.constant 0 : i32
    %c0_i32_1 = arith.constant 0 : i32
    return %2, %c0_i32_0 : i32, i32
  }
  func.func @transform_2(%arg0: i32, %arg1: i32) -> (i32, i32) {
    %c0_i32 = arith.constant 0 : i32
    %c0_i32_0 = arith.constant 0 : i32
    return %arg0, %c0_i32 : i32, i32
  }
}

</mosaic_0001>

<bundles_post_ra>
// kernel: tpu_custom_call.1
= control target key start
LH: loop header
LB: loop body
LE: loop exit
PB: predicated region body
PF: predicated region fallthrough
CT: control target
= control target key end

     0   :  { %vm87_vm0 = vcmask 31744   ;;  %v284_v3 = vmov 0   ;;  %s329_s0 = inlined_call_operand.vmem [shape: f32[16,4], index: 0, kind: input, shape index: {}]   ;;  %s330_s1 = inlined_call_operand.vmem [shape: s32[16,1], index: 1, kind: input, shape index: {}]   ;;  %s331_s2 = inlined_call_operand.hbm [shape: f32[8,128], index: 2, kind: output, shape index: {}]  }
   0x1   :  { %v83_v0 = vld [vmem:[%s329_s0] sm:$0xff]  ;;  %244 = vset.pattern.permute.xlu1 %v284_v3  ;;  %245 = vset.pattern.permute.xlu0 %v284_v3 }
   0x2   :  { %v85_v1 = vld [vmem:[%s330_s1] sm:$0xff]  ;;  %v88_v2 = vsel %vm87_vm0, %v83_v0, -inf }
   0x3   :  { %7 = vsyncpa [#allocation4], 0  ;;  %89 = vmax.xlane.f32.xlu0 %v88_v2  ;;  %109 = vperm.xlu1 %244, %v85_v1   ;;  %v84_v4 = vld [vmem:[%s329_s0 + $0x8] sm:$0xff]  ;;  %v106_v9 = vlaneseq  ;;  %vm80_vm3 = vcmask 7168   ;;  %v285_v25 = vmov 0.0   ;;  %s286_s0 = smov [#allocation3]  }
   0x4   :  { %v91_v5 = vsel %vm87_vm0, %v84_v4, -inf  ;;  %v86_v6 = vld [vmem:[%s330_s1 + $0x8] sm:$0xff]  ;;  %81 = vst.msk [vmem:[#allocation2] sm:$0xff] %vm80_vm3, %v285_v25  ;;  %s216_s1 = sshll.u32 %s286_s0, 4  ;;  %s218_s19 = sshll.u32 %s331_s2, 4  ;;  %s217_s1 = int_to_ptr.vmem [resolvable:$true] %s216_s1  ;;  %s219_s19 = int_to_ptr.hbm [resolvable:$true] %s218_s19 }
   0x5   :  { %v107_v12 = vand.u32 127, %v106_v9  ;;  %82 = vst.msk [vmem:[#allocation2 + $0x8] sm:$0xff] %vm80_vm3, %v285_v25 }
   0xb   :  { %92 = vmax.xlane.f32.xlu0 %v91_v5  ;;  %112 = vperm.xlu1 %244, %v86_v6   ;;  %v184_v62 = vld [vmem:[#allocation2] sm:$0xff] }
  0x75   :  { %v110_v11 = vpop.permute.xlu1 %109 }
  0x76   :  { %v90_v7 = vpop.xlane.xlu0 %89  ;;  %vm114_vm1 = vcmp.eq.s32.totalorder %v107_v12, %v110_v11 }
  0x77   :  { %v94_v8 = vsub.f32 %v83_v0, %v90_v7  ;;  %v185_v7 = vld [vmem:[#allocation2 + $0x8] sm:$0xff] }
  0x79   :  { %v96_v10 = vmul.f32 1.442695, %v94_v8 }
  0x7b   :  { %246 = vpow2.f32 %v96_v10 }
  0x7d   :  { %v113_v20 = vpop.permute.xlu1 %112 }
  0x7e   :  { %v93_v13 = vpop.xlane.xlu0 %92  ;;  %vm115_vm2 = vcmp.eq.s32.totalorder %v107_v12, %v113_v20 }
  0x7f   :  { %v95_v14 = vsub.f32 %v84_v4, %v93_v13 }
  0x81   :  { %v247_v15 = vpop.eup %246  ;;  %v98_v16 = vmul.f32 1.442695, %v95_v14 }
  0x82   :  { %v100_v17 = vsel %vm87_vm0, %v247_v15, 0.0  ;;  %v116_v18 = vsel %vm114_vm1, %v247_v15, 0.0 }
  0x83   :  { %248 = vpow2.f32 %v98_v16  ;;  %101 = vadd.xlane.f32.xlu2 %v100_v17  ;;  %v118_v19 = vsel %vm87_vm0, %v116_v18, 0.0 }
  0x84   :  { %119 = vadd.xlane.f32.xlu0 %v118_v19 }
  0x89   :  { %v249_v21 = vpop.eup %248 }
  0x8a   :  { %v103_v22 = vsel %vm87_vm0, %v249_v21, 0.0  ;;  %v117_v23 = vsel %vm115_vm2, %v249_v21, 0.0 }
  0x8b   :  { %104 = vadd.xlane.f32.xlu2 %v103_v22  ;;  %v121_v24 = vsel %vm87_vm0, %v117_v23, 0.0 }
  0x8c   :  { %122 = vadd.xlane.f32.xlu1 %v121_v24 }
  0xf6   :  { %v102_v26 = vpop.xlane.xlu2 %101 }
  0xf7   :  { %250 = vrcp.f32 %v102_v26  ;;  %v135_v31 = vand.u32 2147483648, %v102_v26  ;;  %v133_v33 = vand.u32 2147483647, %v102_v26  ;;  %vm129_vm5 = vweird.f32 %v102_v26  ;;  %v120_v40 = vpop.xlane.xlu0 %119 }
  0xf9   :  { %v136_v36 = vor.u32 1.1754944e-38, %v135_v31  ;;  %vm134_vm7 = vcmp.eq.f32.partialorder %v133_v33, 8.507059e+37 }
  0xfd   :  { %v251_v27 = vpop.eup %250 }
  0xfe   :  { %v125_v28 = vmul.f32 %v251_v27, %v102_v26  ;;  %v105_v29 = vpop.xlane.xlu2 %104  ;;  %vm130_vm4 = vweird.f32 %v251_v27 }
  0xff   :  { %252 = vrcp.f32 %v105_v29  ;;  %vm131_vm6 = vmor %vm129_vm5, %vm130_vm4  ;;  %v150_v43 = vand.u32 2147483648, %v105_v29  ;;  %v148_v46 = vand.u32 2147483647, %v105_v29  ;;  %vm144_vm9 = vweird.f32 %v105_v29  ;;  %v123_v51 = vpop.xlane.xlu1 %122 }
 0x100   :  { %v126_v30 = vsub.f32 1.0, %v125_v28 }
 0x101   :  { %v151_v49 = vor.u32 1.1754944e-38, %v150_v43  ;;  %vm149_vm11 = vcmp.eq.f32.partialorder %v148_v46, 8.507059e+37 }
 0x102   :  { %v127_v32 = vmul.f32 %v251_v27, %v126_v30 }
 0x104   :  { %v128_v34 = vadd.f32 %v251_v27, %v127_v32 }
 0x105   :  { %v253_v35 = vpop.eup %252 }
 0x106   :  { %v132_v37 = vsel %vm131_vm6, %v251_v27, %v128_v34  ;;  %v140_v38 = vmul.f32 %v253_v35, %v105_v29  ;;  %vm145_vm8 = vweird.f32 %v253_v35 }
 0x107   :  { %v137_v39 = vsel %vm134_vm7, %v136_v36, %v132_v37  ;;  %vm146_vm10 = vmor %vm144_vm9, %vm145_vm8 }
 0x108   :  { %v138_v41 = vmul.f32 %v137_v39, %v120_v40  ;;  %v141_v42 = vsub.f32 1.0, %v140_v38 }
 0x10a   :  { %v154_v44 = vmax.f32 %v138_v41, 1e-07  ;;  %v142_v45 = vmul.f32 %v253_v35, %v141_v42 }
 0x10c   :  { %v156_v47 = vmin.f32 %v154_v44, 0.9999999  ;;  %v143_v48 = vadd.f32 %v253_v35, %v142_v45 }
 0x10e   :  { %254 = vlog2.f32 %v156_v47  ;;  %v147_v50 = vsel %vm146_vm10, %v253_v35, %v143_v48  ;;  %v158_v57 = vsub.f32 1.0, %v156_v47 }
 0x10f   :  { %v152_v52 = vsel %vm149_vm11, %v151_v49, %v147_v50 }
 0x110   :  { %v153_v53 = vmul.f32 %v152_v52, %v123_v51  ;;  %v160_v60 = vmul.f32 %v158_v57, %v158_v57 }
 0x112   :  { %v155_v54 = vmax.f32 %v153_v53, 1e-07 }
 0x114   :  { %v255_v55 = vpop.eup %254  ;;  %v157_v56 = vmin.f32 %v155_v54, 0.9999999 }
 0x115   :  { %v163_v58 = vmul.f32 0.6931472, %v255_v55 }
 0x116   :  { %256 = vlog2.f32 %v157_v56  ;;  %v159_v2 = vsub.f32 1.0, %v157_v56 }
 0x117   :  { %v166_v59 = vsub.f32 0.0, %v163_v58 }
 0x118   :  { %v161_v5 = vmul.f32 %v159_v2, %v159_v2 }
 0x119   :  { %v168_v61 = vmul.f32 0.25, %v166_v59 }
 0x11b   :  { %v170_v63 = vmul.f32 %v168_v61, %v160_v60 }
 0x11c   :  { %v257_v0 = vpop.eup %256 }
 0x11d   :  { %v186_v1 = vadd.f32 %v184_v62, %v170_v63  ;;  %v165_v3 = vmul.f32 0.6931472, %v257_v0 }
 0x11f   :  { %189 = vst.msk [vmem:[#allocation2] sm:$0xff] %vm80_vm3, %v186_v1  ;;  %v167_v4 = vsub.f32 0.0, %v165_v3 }
 0x121   :  { %v169_v6 = vmul.f32 0.25, %v167_v4 }
 0x123   :  { %v171_v8 = vmul.f32 %v169_v6, %v161_v5 }
 0x125   :  { %v187_v9 = vadd.f32 %v185_v7, %v171_v8 }
 0x126   :  { %v194_v10 = vld [vmem:[#allocation2] sm:$0xff] }
 0x127   :  { %190 = vst.msk [vmem:[#allocation2 + $0x8] sm:$0xff] %vm80_vm3, %v187_v9  ;;  %v196_v12 = vsel %vm80_vm3, %v194_v10, 0.0 }
 0x12e   :  { %v195_v11 = vld [vmem:[#allocation2 + $0x8] sm:$0xff] }
 0x12f   :  { %v197_v13 = vsel %vm80_vm3, %v195_v11, 0.0 }
 0x130   :  { %v198_v14 = vadd.f32 %v197_v13, %v196_v12 }
 0x132   :  { %199 = vadd.xlane.f32.xlu2 %v198_v14 }
 0x1a5   :  { %v200_v15 = vpop.xlane.xlu2 %199 }
 0x1a6   :  { %v201_v16 = vrot.slane %v200_v15, 4 }
 0x1a8   :  { %v202_v17 = vadd.f32 %v201_v16, %v200_v15 }
 0x1aa   :  { %v203_v18 = vrot.slane %v202_v17, 2 }
 0x1ac   :  { %v204_v19 = vadd.f32 %v203_v18, %v202_v17 }
 0x1ae   :  { %v205_v20 = vrot.slane %v204_v19, 1 }
 0x1b0   :  { %v206_v21 = vadd.f32 %v205_v20, %v204_v19 }
 0x1b2   :  { %239 = vpush %v206_v21 }
 0x1e3   :  { %s240_s20 = spop %239 }
 0x1e4   :  { %v208_v22 = vstv %s240_s20 }
 0x1e5   :  { %210 = vst [vmem:[#allocation3] sm:$0xff] %v208_v22 }
 0x1e6   :  { %221 = dma.vmem_to_hbm [thread:$0]  %s217_s1, 128, %s219_s19, [#allocation4]  }
 0x1e7   :  { %282 = dma.done.wait [#allocation4], 128  }
 0x1e8   :  { %283 = vsyncadd [#allocation4], 4294967168 }
 0x1e9   :  { %226 = vsyncpa [#allocation4], 1 }

</bundles_post_ra>
